<compile_context>
chip_gen: v5e
topology: v5e:2x2
jax: 0.10.0
libtpu: 0.0.40
codegen_flags: <defaults>
</compile_context>

<pallas_src>
import functools

import jax
import jax.numpy as jnp
from jax.experimental import pallas as pl
from jax.experimental.pallas import tpu as pltpu

STATE_SIZE = 2    # MountainCarContinuous observation dim
ACTION_SIZE = 1   # MountainCarContinuous action dim (fc3 lane-reduce assumes 1)
HIDDEN = 256

MAX_BATCH_TILE = 512   # rows per grid step for large batches


def _round_up(x, m):
    return ((x + m - 1) // m) * m


def actor_kernel(x_ref, w1_ref, b1_ref, w2_ref, b2_ref, w3_ref, b3_ref, o_ref):
    x = x_ref[...]        # [TB, S] f32
    w1 = w1_ref[...]      # [S, H] f32
    S = x.shape[1]

    # fc1 + relu: S (=2) broadcast FMAs on the VPU. A padded MXU matmul would
    # waste 126/128 of the K dimension and a 128-wide weight DMA.
    h1 = b1_ref[...] + x[:, 0:1] * w1[0:1, :]
    for s in range(1, S):
        h1 = h1 + x[:, s:s + 1] * w1[s:s + 1, :]
    h1 = jnp.maximum(h1, 0.0)

    # fc2 + relu: the one real matmul -> MXU, weights in their stored dtype
    # (bf16 by default), f32 accumulation.
    h2 = jnp.dot(h1.astype(w2_ref.dtype), w2_ref[...],
                 preferred_element_type=jnp.float32) + b2_ref[...]
    h2 = jnp.maximum(h2, 0.0)

    # fc3 + tanh: [H] -> [1] via elementwise multiply + lane reduce (XLU slot),
    # no padded MXU pass. Output stays [TB, 1].
    out = jnp.sum(h2 * w3_ref[...], axis=-1, keepdims=True) + b3_ref[...]
    o_ref[...] = jnp.tanh(out)


def prepare_params(params, mxu_weight_dtype=jnp.bfloat16):
    """One-time re-layout of PyTorch-style Linear params for the kernel.

    PyTorch nn.Linear stores W as [out, in]; the kernel wants:
      w1: [S, H] f32, b1: [1, H] f32
      w2: [H, H] in mxu_weight_dtype (bf16 default), b2: [1, H] f32
      w3: [1, H] f32 (row vector for the lane-reduce), b3: [1, 1] f32
    """
    w1, b1, w2, b2, w3, b3 = params
    assert w3.shape[0] == 1, "lane-reduce fc3 assumes action_size == 1"
    return (
        jnp.asarray(w1, jnp.float32).T,                     # [S, H]
        jnp.asarray(b1, jnp.float32).reshape(1, -1),        # [1, H]
        jnp.asarray(w2, jnp.float32).T.astype(mxu_weight_dtype),  # [H, H]
        jnp.asarray(b2, jnp.float32).reshape(1, -1),        # [1, H]
        jnp.asarray(w3, jnp.float32).reshape(1, -1),        # [1, H]
        jnp.asarray(b3, jnp.float32).reshape(1, 1),         # [1, 1]
    )


def _actor_forward(state, prepared):
    """state: [B, STATE_SIZE] f32, prepared: output of prepare_params()."""
    w1t, b1, w2t, b2, w3, b3 = prepared
    B = state.shape[0]
    S = w1t.shape[0]
    H = w1t.shape[1]

    # Pick a batch tile: multiple of 8 sublanes, capped so large batches are
    # split across grid steps (and TensorCores on v7x).
    tb = min(_round_up(max(B, 1), 8), MAX_BATCH_TILE)
    bp = _round_up(max(B, 1), tb)
    x = state.astype(jnp.float32)
    if bp != B:
        x = jnp.zeros((bp, S), jnp.float32).at[:B].set(x)

    out = pl.pallas_call(
        actor_kernel,
        out_shape=jax.ShapeDtypeStruct((bp, 1), jnp.float32),
        grid=(bp // tb,),
        in_specs=[
            pl.BlockSpec((tb, S), lambda i: (i, 0)),   # x: tiled along batch
            pl.BlockSpec((S, H), lambda i: (0, 0)),    # weights: VMEM-resident
            pl.BlockSpec((1, H), lambda i: (0, 0)),
            pl.BlockSpec((H, H), lambda i: (0, 0)),
            pl.BlockSpec((1, H), lambda i: (0, 0)),
            pl.BlockSpec((1, H), lambda i: (0, 0)),
            pl.BlockSpec((1, 1), lambda i: (0, 0)),
        ],
        out_specs=pl.BlockSpec((tb, 1), lambda i: (i, 0)),
        compiler_params=pltpu.CompilerParams(
            dimension_semantics=("parallel",)),
    )(x, w1t, b1, w2t, b2, w3, b3)

    return out[:B]


actor_forward = jax.jit(_actor_forward)


def init_params(key):
    """nn.Linear default init: U(-1/sqrt(fan_in), 1/sqrt(fan_in)), W is [out, in]."""
    ks = jax.random.split(key, 6)

    def linear(kw, kb, fan_in, fan_out):
        bound = 1.0 / jnp.sqrt(fan_in)
        w = jax.random.uniform(kw, (fan_out, fan_in), jnp.float32, -bound, bound)
        b = jax.random.uniform(kb, (fan_out,), jnp.float32, -bound, bound)
        return w, b

    w1, b1 = linear(ks[0], ks[1], STATE_SIZE, HIDDEN)
    w2, b2 = linear(ks[2], ks[3], HIDDEN, HIDDEN)
    w3, b3 = linear(ks[4], ks[5], HIDDEN, ACTION_SIZE)
    return (w1, b1, w2, b2, w3, b3)


def actor_ref_f32(state, params):
    """Pure-JAX f32 reference of the PyTorch forward pass."""
    w1, b1, w2, b2, w3, b3 = params
    x = jnp.maximum(state @ w1.T + b1, 0.0)
    x = jnp.maximum(x @ w2.T + b2, 0.0)
    return jnp.tanh(x @ w3.T + b3)


def actor_ref_prepared(state, prepared):
    """Reference using the prepared (bf16-weight) params — matches kernel math."""
    w1t, b1, w2t, b2, w3, b3 = prepared
    h1 = jnp.maximum(state @ w1t + b1, 0.0)
    h2 = jnp.maximum(
        jnp.dot(h1.astype(w2t.dtype), w2t,
                preferred_element_type=jnp.float32) + b2, 0.0)
    return jnp.tanh(jnp.sum(h2 * w3, axis=-1, keepdims=True) + b3)


# TODO(synk): Model.save_checkpoint / load_checkpoint are host-side torch I/O
# and have no Pallas equivalent; only the forward pass is implemented.

if __name__ == "__main__":
    key = jax.random.PRNGKey(0)
    pkey, skey = jax.random.split(key)
    params = init_params(pkey)
    prepared = prepare_params(params)          # one-time weight prep
    state = jax.random.normal(skey, (8, STATE_SIZE), jnp.float32)  # batch=8

    out = actor_forward(state, prepared)
    out = jax.block_until_ready(out)
    assert out.shape == (8, ACTION_SIZE), out.shape

    # Tight check vs a reference using identical (bf16-quantized) weights.
    ref_q = actor_ref_prepared(state, prepared)
    err_q = jnp.max(jnp.abs(out - ref_q))
    assert err_q < 5e-3, float(err_q)

    # Sanity check vs the full-f32 PyTorch-equivalent forward (bf16 weights
    # introduce ~1e-3..1e-2 differences by design).
    ref_f = actor_ref_f32(state, params)
    err_f = jnp.max(jnp.abs(out - ref_f))
    assert err_f < 5e-2, float(err_f)

    print("KERNEL_OK")
</pallas_src>

<mosaic_0001>
module attributes {stable_mosaic.version = 11 : i64} {
  func.func @actor_kernel(%arg0: i32, %arg1: memref<8x2xf32, #tpu.memory_space<vmem>>, %arg2: memref<2x256xf32, #tpu.memory_space<vmem>>, %arg3: memref<1x256xf32, #tpu.memory_space<vmem>>, %arg4: memref<256x256xbf16, #tpu.memory_space<vmem>>, %arg5: memref<1x256xf32, #tpu.memory_space<vmem>>, %arg6: memref<1x256xf32, #tpu.memory_space<vmem>>, %arg7: memref<1x1xf32, #tpu.memory_space<vmem>>, %arg8: memref<8x1xf32, #tpu.memory_space<vmem>>) attributes {dimension_semantics = [#tpu.dimension_semantics<parallel>], iteration_bounds = array<i64: 1>, scalar_prefetch = 0 : i64, scratch_operands = 0 : i64, tpu.core_type = #tpu.core_type<tc>, window_params = [{transform_indices = @transform_0, window_bounds = array<i64: 8, 2>}, {pipeline_mode = #tpu.pipeline_mode<synchronous>, transform_indices = @transform_1, window_bounds = array<i64: 2, 256>}, {pipeline_mode = #tpu.pipeline_mode<synchronous>, transform_indices = @transform_2, window_bounds = array<i64: 1, 256>}, {pipeline_mode = #tpu.pipeline_mode<synchronous>, transform_indices = @transform_3, window_bounds = array<i64: 256, 256>}, {pipeline_mode = #tpu.pipeline_mode<synchronous>, transform_indices = @transform_4, window_bounds = array<i64: 1, 256>}, {pipeline_mode = #tpu.pipeline_mode<synchronous>, transform_indices = @transform_5, window_bounds = array<i64: 1, 256>}, {pipeline_mode = #tpu.pipeline_mode<synchronous>, transform_indices = @transform_6, window_bounds = array<i64: 1, 1>}, {transform_indices = @transform_7, window_bounds = array<i64: 8, 1>}]} {
    %c0 = arith.constant 0 : index
    %c0_0 = arith.constant 0 : index
    %0 = vector.load %arg1[%c0, %c0_0] : memref<8x2xf32, #tpu.memory_space<vmem>>, vector<8x2xf32>
    %c0_1 = arith.constant 0 : index
    %c0_2 = arith.constant 0 : index
    %1 = vector.load %arg2[%c0_1, %c0_2] : memref<2x256xf32, #tpu.memory_space<vmem>>, vector<2x256xf32>
    %c0_3 = arith.constant 0 : index
    %c0_4 = arith.constant 0 : index
    %2 = vector.load %arg3[%c0_3, %c0_4] : memref<1x256xf32, #tpu.memory_space<vmem>>, vector<1x256xf32>
    %3 = vector.extract_strided_slice %0 {offsets = [0, 0], sizes = [8, 1], strides = [1, 1]} : vector<8x2xf32> to vector<8x1xf32>
    %4 = vector.extract_strided_slice %1 {offsets = [0, 0], sizes = [1, 256], strides = [1, 1]} : vector<2x256xf32> to vector<1x256xf32>
    %5 = vector.broadcast %3 : vector<8x1xf32> to vector<8x256xf32>
    %6 = vector.broadcast %4 : vector<1x256xf32> to vector<8x256xf32>
    %7 = arith.mulf %5, %6 : vector<8x256xf32>
    %8 = vector.broadcast %2 : vector<1x256xf32> to vector<8x256xf32>
    %9 = arith.addf %8, %7 : vector<8x256xf32>
    %10 = vector.extract_strided_slice %0 {offsets = [0, 1], sizes = [8, 1], strides = [1, 1]} : vector<8x2xf32> to vector<8x1xf32>
    %11 = vector.extract_strided_slice %1 {offsets = [1, 0], sizes = [1, 256], strides = [1, 1]} : vector<2x256xf32> to vector<1x256xf32>
    %12 = vector.broadcast %10 : vector<8x1xf32> to vector<8x256xf32>
    %13 = vector.broadcast %11 : vector<1x256xf32> to vector<8x256xf32>
    %14 = arith.mulf %12, %13 : vector<8x256xf32>
    %15 = arith.addf %9, %14 : vector<8x256xf32>
    %cst = arith.constant 0.000000e+00 : f32
    %16 = vector.broadcast %cst : f32 to vector<8x256xf32>
    %17 = arith.maximumf %15, %16 : vector<8x256xf32>
    %18 = arith.truncf %17 : vector<8x256xf32> to vector<8x256xbf16>
    %c0_5 = arith.constant 0 : index
    %c0_6 = arith.constant 0 : index
    %19 = vector.load %arg4[%c0_5, %c0_6] : memref<256x256xbf16, #tpu.memory_space<vmem>>, vector<256x256xbf16>
    %cst_7 = arith.constant dense<0.000000e+00> : vector<8x256xf32>
    %20 = tpu.matmul %18, %19, %cst_7 {dimension_numbers = #tpu.dot_dimension_numbers<[1], [0], [0], [1], [0, 0, 1, 1], [], []>} : vector<8x256xbf16>, vector<256x256xbf16>, vector<8x256xf32> -> vector<8x256xf32>
    %c0_8 = arith.constant 0 : index
    %c0_9 = arith.constant 0 : index
    %21 = vector.load %arg5[%c0_8, %c0_9] : memref<1x256xf32, #tpu.memory_space<vmem>>, vector<1x256xf32>
    %22 = vector.broadcast %21 : vector<1x256xf32> to vector<8x256xf32>
    %23 = arith.addf %20, %22 : vector<8x256xf32>
    %cst_10 = arith.constant 0.000000e+00 : f32
    %24 = vector.broadcast %cst_10 : f32 to vector<8x256xf32>
    %25 = arith.maximumf %23, %24 : vector<8x256xf32>
    %c0_11 = arith.constant 0 : index
    %c0_12 = arith.constant 0 : index
    %26 = vector.load %arg6[%c0_11, %c0_12] : memref<1x256xf32, #tpu.memory_space<vmem>>, vector<1x256xf32>
    %27 = vector.broadcast %26 : vector<1x256xf32> to vector<8x256xf32>
    %28 = arith.mulf %25, %27 : vector<8x256xf32>
    %cst_13 = arith.constant dense<0.000000e+00> : vector<8xf32>
    %29 = vector.multi_reduction <add>, %28, %cst_13 [1] : vector<8x256xf32> to vector<8xf32>
    %30 = vector.shape_cast %29 : vector<8xf32> to vector<8x1xf32>
    %c0_14 = arith.constant 0 : index
    %c0_15 = arith.constant 0 : index
    %31 = vector.load %arg7[%c0_14, %c0_15] : memref<1x1xf32, #tpu.memory_space<vmem>>, vector<1x1xf32>
    %32 = vector.broadcast %31 : vector<1x1xf32> to vector<8x1xf32>
    %33 = arith.addf %30, %32 : vector<8x1xf32>
    %34 = math.tanh %33 : vector<8x1xf32>
    %c0_16 = arith.constant 0 : index
    %c0_17 = arith.constant 0 : index
    %35 = vector.load %arg8[%c0_16, %c0_17] : memref<8x1xf32, #tpu.memory_space<vmem>>, vector<8x1xf32>
    tpu.vector_store %arg8[%c0_16, %c0_17], %34 {strides = array<i32>} : memref<8x1xf32, #tpu.memory_space<vmem>>, vector<8x1xf32>,
    return
  }
  func.func @transform_0(%arg0: i32) -> (i32, i32) {
    %c0_i32 = arith.constant 0 : i32
    %c0_i32_0 = arith.constant 0 : i32
    return %arg0, %c0_i32 : i32, i32
  }
  func.func @transform_1(%arg0: i32) -> (i32, i32) {
    %c0_i32 = arith.constant 0 : i32
    %c0_i32_0 = arith.constant 0 : i32
    %c0_i32_1 = arith.constant 0 : i32
    return %c0_i32, %c0_i32_0 : i32, i32
  }
  func.func @transform_2(%arg0: i32) -> (i32, i32) {
    %c0_i32 = arith.constant 0 : i32
    %c0_i32_0 = arith.constant 0 : i32
    %c0_i32_1 = arith.constant 0 : i32
    return %c0_i32, %c0_i32_0 : i32, i32
  }
  func.func @transform_3(%arg0: i32) -> (i32, i32) {
    %c0_i32 = arith.constant 0 : i32
    %c0_i32_0 = arith.constant 0 : i32
    %c0_i32_1 = arith.constant 0 : i32
    return %c0_i32, %c0_i32_0 : i32, i32
  }
  func.func @transform_4(%arg0: i32) -> (i32, i32) {
    %c0_i32 = arith.constant 0 : i32
    %c0_i32_0 = arith.constant 0 : i32
    %c0_i32_1 = arith.constant 0 : i32
    return %c0_i32, %c0_i32_0 : i32, i32
  }
  func.func @transform_5(%arg0: i32) -> (i32, i32) {
    %c0_i32 = arith.constant 0 : i32
    %c0_i32_0 = arith.constant 0 : i32
    %c0_i32_1 = arith.constant 0 : i32
    return %c0_i32, %c0_i32_0 : i32, i32
  }
  func.func @transform_6(%arg0: i32) -> (i32, i32) {
    %c0_i32 = arith.constant 0 : i32
    %c0_i32_0 = arith.constant 0 : i32
    %c0_i32_1 = arith.constant 0 : i32
    return %c0_i32, %c0_i32_0 : i32, i32
  }
  func.func @transform_7(%arg0: i32) -> (i32, i32) {
    %c0_i32 = arith.constant 0 : i32
    %c0_i32_0 = arith.constant 0 : i32
    return %arg0, %c0_i32 : i32, i32
  }
}

</mosaic_0001>

<bundles_post_ra>
// kernel: _actor_forward.1
= control target key start
LH: loop header
LB: loop body
LE: loop exit
PB: predicated region body
PF: predicated region fallthrough
CT: control target
= control target key end

     0   :  { %s627_s0 = inlined_call_operand.vmem [shape: f32[8,2], index: 0, kind: input, shape index: {}]   ;;  %s628_s1 = inlined_call_operand.vmem [shape: f32[2,256], index: 1, kind: input, shape index: {}]   ;;  %s629_s2 = inlined_call_operand.vmem [shape: f32[1,256], index: 2, kind: input, shape index: {}]   ;;  %s630_s3 = inlined_call_operand.hbm [shape: bf16[256,256], index: 3, kind: input, shape index: {}]   ;;  %s631_s4 = inlined_call_operand.vmem [shape: f32[1,256], index: 4, kind: input, shape index: {}]   ;;  %s632_s5 = inlined_call_operand.vmem [shape: f32[1,256], index: 5, kind: input, shape index: {}]   ;;  %s633_s6 = inlined_call_operand.<no memory space> [shape: f32[1,1], index: 6, kind: input, shape index: {}]   ;;  %s634_s7 = inlined_call_operand.vmem [shape: f32[8,1], index: 7, kind: output, shape index: {}]  }
   0x1   :  { %v12_v0 = vstv %s633_s6 }
   0x2   :  { %13 = vst [vmem:[#allocation2] sm:$0x1] %v12_v0 }
   0x3   :  { %14 = vsyncpa [#allocation4], 0  ;;  %s25_s28 = sshll.u32 %s630_s3, 4  ;;  %s558_s29 = smov [#allocation3]   ;;  %s26_s28 = int_to_ptr.hbm [resolvable:$true] %s25_s28 }
   0x4   :  { %s27_s30 = sshll.u32 %s558_s29, 4  ;;  %s559_s8 = smov 128   ;;  %s28_s30 = int_to_ptr.vmem [resolvable:$true] %s27_s30 }
   0x5   :  { %s560_s9 = smov 8  }
   0x6   :  { %33 = dma.hbm_to_vmem [thread:$0]  %s26_s28, 4096, %s28_s30, [#allocation4], %s559_s8, %s559_s8, %s560_s9  }
   0x7   :  { %556 = dma.done.wait [#allocation4], 4096  }
   0x8   :  { %557 = vsyncadd [#allocation4], 4294963200  ;;  %v561_v1 = vmov 0   ;;  %v44_v2 = vld [vmem:[%s627_s0] sm:$0xff]  ;;  %v420_v3 = vld [vmem:[#allocation3 + $0x70] sm:$0xf] }
   0x9   :  { %527 = vset.pattern.permute.xlu0 %v561_v1  ;;  %v505_v4 = vld [vmem:[#allocation3 + $0x74] sm:$0xf0]  ;;  %v484_v6 = vld [vmem:[#allocation3 + $0xf0] sm:$0xf]  ;;  %v504_v8 = vld [vmem:[#allocation3 + $0x74] sm:$0xf] }
   0xa   :  { %49 = vperm.xlu0 %527, %v44_v2   ;;  %v421_v5 = vor.u32 %v505_v4, %v420_v3  ;;  %v521_v7 = vld [vmem:[#allocation3 + $0xf4] sm:$0xf0]  ;;  %v422_v10 = vld [vmem:[#allocation3 + $0x78] sm:$0xf0]  ;;  %v520_v11 = vld [vmem:[#allocation3 + $0xf4] sm:$0xf] }
   0xb   :  { %v485_v9 = vor.u32 %v521_v7, %v484_v6  ;;  %v486_v12 = vld [vmem:[#allocation3 + $0xf8] sm:$0xf0]  ;;  %v425_v13 = vor.u32 %v504_v8, %v422_v10  ;;  %v412_v15 = vld [vmem:[#allocation3 + $0x60] sm:$0xf]  ;;  %v503_v16 = vld [vmem:[#allocation3 + $0x64] sm:$0xf0] }
   0xc   :  { %284 = vmatpush.bf16.msra.mxu0 %v421_v5  ;;  %v489_v14 = vor.u32 %v520_v11, %v486_v12  ;;  %v476_v17 = vld [vmem:[#allocation3 + $0xe0] sm:$0xf]  ;;  %v413_v18 = vor.u32 %v503_v16, %v412_v15  ;;  %v519_v19 = vld [vmem:[#allocation3 + $0xe4] sm:$0xf0]  ;;  %v502_v20 = vld [vmem:[#allocation3 + $0x64] sm:$0xf] }
   0xd   :  { %297 = vmatpush.bf16.msra.mxu1 %v485_v9  ;;  %v414_v21 = vld [vmem:[#allocation3 + $0x68] sm:$0xf0]  ;;  %310 = vmatpush.bf16.msra.mxu2 %v425_v13  ;;  %v477_v22 = vor.u32 %v519_v19, %v476_v17  ;;  %v518_v24 = vld [vmem:[#allocation3 + $0xe4] sm:$0xf]  ;;  %v404_v26 = vld [vmem:[#allocation3 + $0x50] sm:$0xf] }
   0xe   :  { %323 = vmatpush.bf16.msra.mxu3 %v489_v14  ;;  %v417_v23 = vor.u32 %v502_v20, %v414_v21  ;;  %v478_v25 = vld [vmem:[#allocation3 + $0xe8] sm:$0xf0]  ;;  %v501_v28 = vld [vmem:[#allocation3 + $0x54] sm:$0xf0]  ;;  %v468_v29 = vld [vmem:[#allocation3 + $0xd0] sm:$0xf] }
   0xf   :  { %v481_v27 = vor.u32 %v518_v24, %v478_v25  ;;  %v517_v30 = vld [vmem:[#allocation3 + $0xd4] sm:$0xf0]  ;;  %v405_v31 = vor.u32 %v501_v28, %v404_v26  ;;  %v500_v32 = vld [vmem:[#allocation3 + $0x54] sm:$0xf]  ;;  %v406_v33 = vld [vmem:[#allocation3 + $0x58] sm:$0xf0] }
  0x10   :  { %285 = vmatpush.bf16.msra.mxu0 %v413_v18  ;;  %v516_v34 = vld [vmem:[#allocation3 + $0xd4] sm:$0xf]  ;;  %v469_v35 = vor.u32 %v517_v30, %v468_v29  ;;  %v470_v36 = vld [vmem:[#allocation3 + $0xd8] sm:$0xf0]  ;;  %v396_v37 = vld [vmem:[#allocation3 + $0x40] sm:$0xf]  ;;  %v409_v40 = vor.u32 %v500_v32, %v406_v33 }
  0x11   :  { %298 = vmatpush.bf16.msra.mxu1 %v477_v22  ;;  %v499_v38 = vld [vmem:[#allocation3 + $0x44] sm:$0xf0]  ;;  %v562_v39 = vmov 1   ;;  %311 = vmatpush.bf16.msra.mxu2 %v417_v23  ;;  %v460_v41 = vld [vmem:[#allocation3 + $0xc0] sm:$0xf]  ;;  %v473_v43 = vor.u32 %v516_v34, %v470_v36  ;;  %vm355_vm0 = vcmask 7168  }
  0x12   :  { %528 = vset.pattern.permute.xlu0 %v562_v39  ;;  %v515_v42 = vld [vmem:[#allocation3 + $0xc4] sm:$0xf0]  ;;  %324 = vmatpush.bf16.msra.mxu3 %v481_v27  ;;  %v498_v44 = vld [vmem:[#allocation3 + $0x44] sm:$0xf]  ;;  %v398_v45 = vld [vmem:[#allocation3 + $0x48] sm:$0xf0]  ;;  %v397_v46 = vor.u32 %v499_v38, %v396_v37 }
  0x13   :  { %69 = vperm.xlu0 %528, %v44_v2   ;;  %v514_v47 = vld [vmem:[#allocation3 + $0xc4] sm:$0xf]  ;;  %v462_v48 = vld [vmem:[#allocation3 + $0xc8] sm:$0xf0]  ;;  %v461_v49 = vor.u32 %v515_v42, %v460_v41  ;;  %v401_v50 = vor.u32 %v498_v44, %v398_v45  ;;  %v388_v52 = vld [vmem:[#allocation3 + $0x30] sm:$0xf] }
  0x14   :  { %286 = vmatpush.bf16.msra.mxu0 %v405_v31  ;;  %v465_v51 = vor.u32 %v514_v47, %v462_v48  ;;  %v497_v53 = vld [vmem:[#allocation3 + $0x34] sm:$0xf0]  ;;  %v452_v54 = vld [vmem:[#allocation3 + $0xb0] sm:$0xf]  ;;  %v496_v57 = vld [vmem:[#allocation3 + $0x34] sm:$0xf] }
  0x15   :  { %299 = vmatpush.bf16.msra.mxu1 %v469_v35  ;;  %312 = vmatpush.bf16.msra.mxu2 %v409_v40  ;;  %v389_v55 = vor.u32 %v497_v53, %v388_v52  ;;  %v513_v56 = vld [vmem:[#allocation3 + $0xb4] sm:$0xf0]  ;;  %v390_v58 = vld [vmem:[#allocation3 + $0x38] sm:$0xf0]  ;;  %v512_v61 = vld [vmem:[#allocation3 + $0xb4] sm:$0xf] }
  0x16   :  { %325 = vmatpush.bf16.msra.mxu3 %v473_v43  ;;  %v453_v59 = vor.u32 %v513_v56, %v452_v54  ;;  %v393_v60 = vor.u32 %v496_v57, %v390_v58  ;;  %v454_v62 = vld [vmem:[#allocation3 + $0xb8] sm:$0xf0]  ;;  %v380_v0 = vld [vmem:[#allocation3 + $0x20] sm:$0xf]  ;;  %v495_v1 = vld [vmem:[#allocation3 + $0x24] sm:$0xf0] }
  0x17   :  { %v457_v63 = vor.u32 %v512_v61, %v454_v62  ;;  %v444_v2 = vld [vmem:[#allocation3 + $0xa0] sm:$0xf]  ;;  %v381_v3 = vor.u32 %v495_v1, %v380_v0  ;;  %v511_v4 = vld [vmem:[#allocation3 + $0xa4] sm:$0xf0]  ;;  %v494_v5 = vld [vmem:[#allocation3 + $0x24] sm:$0xf] }
  0x18   :  { %287 = vmatpush.bf16.msra.mxu0 %v397_v46  ;;  %v382_v6 = vld [vmem:[#allocation3 + $0x28] sm:$0xf0]  ;;  %v445_v7 = vor.u32 %v511_v4, %v444_v2  ;;  %v510_v9 = vld [vmem:[#allocation3 + $0xa4] sm:$0xf]  ;;  %v372_v12 = vld [vmem:[#allocation3 + $0x10] sm:$0xf] }
  0x19   :  { %300 = vmatpush.bf16.msra.mxu1 %v461_v49  ;;  %313 = vmatpush.bf16.msra.mxu2 %v401_v50  ;;  %v385_v8 = vor.u32 %v494_v5, %v382_v6  ;;  %v446_v10 = vld [vmem:[#allocation3 + $0xa8] sm:$0xf0]  ;;  %v493_v13 = vld [vmem:[#allocation3 + $0x14] sm:$0xf0]  ;;  %v436_v14 = vld [vmem:[#allocation3 + $0x90] sm:$0xf] }
  0x1a   :  { %326 = vmatpush.bf16.msra.mxu3 %v465_v51  ;;  %v449_v11 = vor.u32 %v510_v9, %v446_v10  ;;  %v373_v15 = vor.u32 %v493_v13, %v372_v12  ;;  %v509_v16 = vld [vmem:[#allocation3 + $0x94] sm:$0xf0]  ;;  %v492_v17 = vld [vmem:[#allocation3 + $0x14] sm:$0xf]  ;;  %v374_v18 = vld [vmem:[#allocation3 + $0x18] sm:$0xf0] }
  0x1b   :  { %v437_v19 = vor.u32 %v509_v16, %v436_v14  ;;  %v377_v20 = vor.u32 %v492_v17, %v374_v18  ;;  %v508_v21 = vld [vmem:[#allocation3 + $0x94] sm:$0xf]  ;;  %v438_v22 = vld [vmem:[#allocation3 + $0x98] sm:$0xf0]  ;;  %v364_v23 = vld [vmem:[#allocation3] sm:$0xf] }
  0x1c   :  { %288 = vmatpush.bf16.msra.mxu0 %v389_v55  ;;  %v441_v24 = vor.u32 %v508_v21, %v438_v22  ;;  %v491_v25 = vld [vmem:[#allocation3 + $0x4] sm:$0xf0]  ;;  %v428_v26 = vld [vmem:[#allocation3 + $0x80] sm:$0xf]  ;;  %v490_v30 = vld [vmem:[#allocation3 + $0x4] sm:$0xf] }
  0x1d   :  { %301 = vmatpush.bf16.msra.mxu1 %v453_v59  ;;  %314 = vmatpush.bf16.msra.mxu2 %v393_v60  ;;  %v507_v27 = vld [vmem:[#allocation3 + $0x84] sm:$0xf0]  ;;  %v365_v28 = vor.u32 %v491_v25, %v364_v23  ;;  %v366_v31 = vld [vmem:[#allocation3 + $0x8] sm:$0xf0]  ;;  %v506_v32 = vld [vmem:[#allocation3 + $0x84] sm:$0xf] }
  0x1e   :  { %327 = vmatpush.bf16.msra.mxu3 %v457_v63  ;;  %v429_v29 = vor.u32 %v507_v27, %v428_v26  ;;  %v369_v33 = vor.u32 %v490_v30, %v366_v31  ;;  %v430_v34 = vld [vmem:[#allocation3 + $0x88] sm:$0xf0]  ;;  %v45_v36 = vld [vmem:[%s628_s1] sm:$0xf] }
  0x1f   :  { %v433_v35 = vor.u32 %v506_v32, %v430_v34  ;;  %v53_v37 = vperm.slane %v45_v36, 0  ;;  %v54_v38 = vperm.slane %v45_v36, 2  ;;  %v46_v40 = vld [vmem:[%s629_s2] sm:$0x3]  ;;  %v72_v43 = vperm.slane %v45_v36, 1 }
  0x20   :  { %289 = vmatpush.bf16.msra.mxu0 %v381_v3  ;;  %v73_v44 = vperm.slane %v45_v36, 3  ;;  %v62_v45 = vperm.slane %v46_v40, 0  ;;  %v63_v46 = vperm.slane %v46_v40, 1  ;;  %v118_v62 = vld [vmem:[%s631_s4] sm:$0x3] }
  0x21   :  { %302 = vmatpush.bf16.msra.mxu1 %v445_v7  ;;  %315 = vmatpush.bf16.msra.mxu2 %v385_v8  ;;  %v57_v41 = vperm.slane %v53_v37, 0  ;;  %v58_v42 = vperm.slane %v54_v38, 0  ;;  %v76_v49 = vperm.slane %v72_v43, 1  ;;  %v120_v63 = vperm.slane %v118_v62, 0  ;;  %v338_v7 = vld [vmem:[%s632_s5] sm:$0x3] }
  0x22   :  { %328 = vmatpush.bf16.msra.mxu3 %v449_v11  ;;  %v77_v50 = vperm.slane %v73_v44, 1  ;;  %v121_v3 = vperm.slane %v118_v62, 1  ;;  %v340_v13 = vperm.slane %v338_v7, 0  ;;  %v341_v14 = vperm.slane %v338_v7, 1  ;;  %v529_v21 = vld [vmem:[#allocation2] ss:$0 sm:$0xff] }
  0x24   :  { %290 = vmatpush.bf16.msra.mxu0 %v373_v15 }
  0x25   :  { %303 = vmatpush.bf16.msra.mxu1 %v437_v19  ;;  %316 = vmatpush.bf16.msra.mxu2 %v377_v20 }
  0x26   :  { %329 = vmatpush.bf16.msra.mxu3 %v441_v24 }
  0x28   :  { %291 = vmatpush.bf16.msra.mxu0 %v365_v28 }
  0x29   :  { %304 = vmatpush.bf16.msra.mxu1 %v429_v29  ;;  %317 = vmatpush.bf16.msra.mxu2 %v369_v33 }
  0x2a   :  { %330 = vmatpush.bf16.msra.mxu3 %v433_v35 }
  0x7c   :  { %v50_v39 = vpop.permute.xlu0 %49 }
  0x7d   :  { %v59_v47 = vmul.f32 %v57_v41, %v50_v39  ;;  %v60_v48 = vmul.f32 %v58_v42, %v50_v39 }
  0x7f   :  { %v66_v52 = vadd.f32 %v62_v45, %v59_v47  ;;  %v67_v53 = vadd.f32 %v63_v46, %v60_v48 }
  0x85   :  { %v70_v51 = vpop.permute.xlu0 %69 }
  0x86   :  { %v78_v54 = vmul.f32 %v76_v49, %v70_v51  ;;  %v79_v55 = vmul.f32 %v77_v50, %v70_v51 }
  0x88   :  { %v80_v56 = vadd.f32 %v78_v54, %v66_v52  ;;  %v81_v57 = vadd.f32 %v79_v55, %v67_v53 }
  0x8a   :  { %v82_v58 = vmax.f32 %v80_v56, 0.0  ;;  %v83_v59 = vmax.f32 %v81_v57, 0.0 }
  0x8c   :  { %v84_v60 = vpack.c.bf16 %v82_v58, %v82_v58  ;;  %v85_v61 = vpack.c.bf16 %v83_v59, %v83_v59 }
  0x8e   :  { %292 = vmatmul.bf16.vlgmr.msra.gmra.mxu0 %v84_v60  ;;  %305 = vmatmul.bf16.vlgmr.msra.gmra.mxu1 %v85_v61 }
  0x8f   :  { %318 = vmatmul.bf16.vlgmr.msra.gmra.mxu2 %v84_v60  ;;  %331 = vmatmul.bf16.vlgmr.msra.gmra.mxu3 %v85_v61 }
 0x10b   :  { %v293_v0 = vpop.f32.mrf.mxu0  ;;  %v306_v1 = vpop.f32.mrf.mxu1 }
 0x10c   :  { %v294_v2 = vadd.f32 %v293_v0, %v120_v63 }
 0x10e   :  { %v307_v4 = vadd.f32 %v306_v1, %v294_v2 }
 0x110   :  { %v336_v11 = vmax.f32 %v307_v4, 0.0 }
 0x112   :  { %v319_v5 = vpop.f32.mrf.mxu2  ;;  %v332_v6 = vpop.f32.mrf.mxu3  ;;  %v344_v16 = vmul.f32 %v340_v13, %v336_v11 }
 0x113   :  { %v320_v8 = vadd.f32 %v319_v5, %v121_v3  ;;  %v295_v9 = vpop.f32.mrf.mxu0  ;;  %v308_v10 = vpop.f32.mrf.mxu1 }
 0x115   :  { %v333_v12 = vadd.f32 %v332_v6, %v320_v8 }
 0x117   :  { %v337_v15 = vmax.f32 %v333_v12, 0.0 }
 0x119   :  { %v345_v17 = vmul.f32 %v341_v14, %v337_v15 }
 0x11a   :  { %v321_v18 = vpop.f32.mrf.mxu2  ;;  %v334_v19 = vpop.f32.mrf.mxu3 }
 0x11b   :  { %v346_v20 = vadd.f32 %v345_v17, %v344_v16 }
 0x11d   :  { %347 = vadd.xlane.f32.xlu1 %v346_v20 }
 0x190   :  { %v348_v22 = vpop.xlane.xlu1 %347 }
 0x191   :  { %v353_v23 = vadd.f32 %v529_v21, %v348_v22 }
 0x193   :  { %530 = vtanh.f32 %v353_v23 }
 0x199   :  { %v531_v24 = vpop.eup %530 }
 0x19a   :  { %356 = vst.msk [vmem:[%s634_s7] sm:$0xff] %vm355_vm0, %v531_v24 }
 0x19b   :  { %361 = vsyncpa [#allocation4], 1 }

</bundles_post_ra>
